<compile_context>
chip_gen: v7x
topology: tpu7x:2x2x1
jax: 0.10.0
libtpu: 0.0.40
codegen_flags: <defaults>
</compile_context>

<pallas_src>
import functools
import math

import jax
import jax.numpy as jnp
import numpy as np
from jax.experimental import pallas as pl
from jax.experimental.pallas import tpu as pltpu

BN_EPS = 1e-5

_L_TILE = 512            # input samples per L tile when L is long (-> 256-lane outputs)
_MAX_SINGLE_TILE = 1024  # max single-tile length; keeps S <= 2 MiB f32 / 1 MiB bf16
_ROW_TARGET = 512        # target bb*C rows per grid step (MXU fill + overhead amortization)


def _choose_batch_block(batch, cin, cout, lt, itemsize):
    """Batches per grid step.  Keeps bb*cin and bb*cout multiples of 8 (sublane tiling)
    unless the block covers the whole batch (block == full dim is always legal), and
    keeps the double-buffered x block comfortably inside VMEM."""
    if batch * cin <= _ROW_TARGET:
        return batch                                  # whole batch in one block
    m_in = 8 // math.gcd(cin, 8)
    m_out = 8 // math.gcd(cout, 8)
    m = m_in * m_out // math.gcd(m_in, m_out)         # smallest legal bb step
    bb = max(m, (max(1, _ROW_TARGET // cin) // m) * m)
    while bb > m and bb * cin * lt * itemsize > (4 << 20):
        bb -= m                                       # VMEM guard for large channel counts
    if bb >= batch:
        return batch
    return bb


def _wavelet_pool_kernel(x_ref, s_ref, w_ref, b_ref, o_ref, acc_ref, *,
                         bb, cin, cout, kl, lt, mix_first):
    """One (batch-block, L-block) grid cell.

    x_ref : (bb*cin, kl*lt)     bb batches of input rows (batch-major), caller dtype
    s_ref : (lt, lt//2)         pairwise-mean matrix, S[2k,k] = S[2k+1,k] = 0.5
    w_ref : (cout, cin)         1x1 conv weight with band duplication + BN folded in
    b_ref : (bb*cout, 1)        fused bias, tiled per batch
    o_ref : (bb*cout, kl*lt//2) output rows
    acc_ref: f32 scratch, (bb*cout, lt) if mix_first else (bb*cin, lt//2)
    """
    lth = lt // 2
    s = s_ref[...]
    w = w_ref[...]
    if mix_first:
        b_all = b_ref[...]                         # (bb*cout, 1)
    else:
        b_one = b_ref[pl.ds(0, cout), :]           # (cout, 1): same bias for every batch

    for j in range(kl):                            # L tiles packed in this step (same S)
        if mix_first:
            # out_ch << C: apply the (few-row) 1x1 conv per batch first, then one large
            # MXU-filling downsample matmul over all bb batches at once.
            for i in range(bb):
                xb = x_ref[pl.ds(i * cin, cin), pl.ds(j * lt, lt)]
                acc_ref[pl.ds(i * cout, cout), :] = jnp.dot(
                    w, xb, preferred_element_type=jnp.float32)
            y = jnp.dot(acc_ref[...], s, preferred_element_type=jnp.float32)
            o_ref[:, pl.ds(j * lth, lth)] = jnp.maximum(
                y + b_all, 0.0).astype(o_ref.dtype)
        else:
            # One large Haar-downsample matmul (rows = bb*cin fills the MXU), then a
            # small per-batch channel mix.
            acc_ref[...] = jnp.dot(x_ref[:, pl.ds(j * lt, lt)], s,
                                   preferred_element_type=jnp.float32)
            for i in range(bb):
                y = jnp.dot(w, acc_ref[pl.ds(i * cin, cin), :],
                            preferred_element_type=jnp.float32)
                o_ref[pl.ds(i * cout, cout), pl.ds(j * lth, lth)] = jnp.maximum(
                    y + b_one, 0.0).astype(o_ref.dtype)


def wavelet_pool_1d(x, w, bias, gamma, beta, running_mean, running_var):
    """Pallas forward of WaveletPool1d / Down_wt1D.

    x : (B, C, L);  w : (out_ch, 2*C)   (1x1 conv kernel dim squeezed)
    bias / gamma / beta / running_mean / running_var : (out_ch,)
    returns (B, out_ch, ceil(L/2)) in x.dtype
    """
    B, C, L = x.shape
    out_ch = w.shape[0]
    assert w.shape[1] == 2 * C, "conv weight must have 2*C input channels"

    if x.dtype not in (jnp.bfloat16, jnp.float32):
        x = x.astype(jnp.float32)
    x_dtype = x.dtype
    low_precision = x_dtype == jnp.bfloat16

    # Same odd-length zero pad as the PyTorch module.
    if L % 2 != 0:
        x = jnp.pad(x, ((0, 0), (0, 0), (0, 1)))
        L += 1
    Lh = L // 2

    # ---- L tiling (lt <= 1024 keeps S small; do NOT grow the tile, grow bb instead) --
    lt = L if L <= _MAX_SINGLE_TILE else _L_TILE
    n_lt = pl.cdiv(L, lt)
    L_pad = n_lt * lt
    lth = lt // 2
    Lh_pad = L_pad // 2

    # ---- matmul order: contract the long (lt x lth) dim against min(C, out_ch).
    # For bf16 inputs, mix-first forces the big matmul to f32, so require a 4x gap.
    mix_first = (4 * out_ch <= C) if low_precision else (out_ch < C)

    # ---- batch blocking ----
    bb = _choose_batch_block(B, C, out_ch, lt, x.dtype.itemsize)
    n_bb = pl.cdiv(B, bb)
    B_pad = n_bb * bb

    # ---- pack several L tiles per step when the whole batch already fits in one block
    kl = 1
    if bb == B and n_lt > 1:
        rows = bb * C
        target_kl = max(1, min(_ROW_TARGET // max(rows, 1), (n_lt + 1) // 2))
        for cand in range(target_kl, 0, -1):       # keep >= 2 L steps when possible (v7x)
            if n_lt % cand == 0:
                kl = cand
                break

    # ---- pad & flatten to a batch-major 2-D row layout (the reshape itself is free) --
    pad_b, pad_l = B_pad - B, L_pad - L
    if pad_b or pad_l:
        x = jnp.pad(x, ((0, pad_b), (0, 0), (0, pad_l)))
    x2 = x.reshape(B_pad * C, L_pad)

    f32 = jnp.float32
    # Fold (a) the duplicated y_H band and (b) eval-mode BatchNorm into weight / bias.
    w = w.astype(f32)
    w_eff = w[:, :C] + w[:, C:]                                        # (O, C)
    scale = gamma.astype(f32) / jnp.sqrt(running_var.astype(f32) + BN_EPS)
    w_fused = w_eff * scale[:, None]                                   # (O, C)
    b_fused = ((bias.astype(f32) - running_mean.astype(f32)) * scale
               + beta.astype(f32)).reshape(out_ch, 1)                  # (O, 1)
    b_tiled = jnp.tile(b_fused, (bb, 1))                               # (bb*O, 1)

    # Feed the MXU in the input dtype on the LARGE matmul; the small f32 channel mix
    # keeps full weight precision unless it is the one touching x (mix_first + bf16).
    s_dtype = x_dtype if (low_precision and not mix_first) else f32
    w_dtype = x_dtype if (low_precision and mix_first) else f32
    r = jnp.arange(lt)[:, None]
    c = jnp.arange(lth)[None, :]
    S = jnp.where((r // 2) == c, 0.5, 0.0).astype(s_dtype)             # (lt, lth)
    w_fused = w_fused.astype(w_dtype)

    acc_shape = (bb * out_ch, lt) if mix_first else (bb * C, lth)
    kernel = functools.partial(_wavelet_pool_kernel, bb=bb, cin=C, cout=out_ch,
                               kl=kl, lt=lt, mix_first=mix_first)

    grid_spec = pltpu.PrefetchScalarGridSpec(
        num_scalar_prefetch=0,
        grid=(n_bb, n_lt // kl),
        in_specs=[
            pl.BlockSpec((bb * C, kl * lt), lambda i, t: (i, t)),      # x rows
            pl.BlockSpec((lt, lth), lambda i, t: (0, 0)),              # S (constant)
            pl.BlockSpec((out_ch, C), lambda i, t: (0, 0)),            # fused weight
            pl.BlockSpec((bb * out_ch, 1), lambda i, t: (0, 0)),       # fused bias
        ],
        out_specs=pl.BlockSpec((bb * out_ch, kl * lth), lambda i, t: (i, t)),
        scratch_shapes=[pltpu.VMEM(acc_shape, jnp.float32)],
    )

    out2 = pl.pallas_call(
        kernel,
        out_shape=jax.ShapeDtypeStruct((B_pad * out_ch, Lh_pad), x_dtype),
        grid_spec=grid_spec,
        compiler_params=pltpu.CompilerParams(
            dimension_semantics=("parallel", "parallel")),
    )(x2, S, w_fused, b_tiled)

    out = out2.reshape(B_pad, out_ch, Lh_pad)
    if B_pad != B or Lh_pad != Lh:
        out = out[:B, :, :Lh]
    return out


def reference_forward(x, w, bias, gamma, beta, running_mean, running_var):
    """Pure-JAX reference mirroring the PyTorch module (eval-mode BN)."""
    B, C, L = x.shape
    if L % 2 != 0:
        x = jnp.pad(x, ((0, 0), (0, 0), (0, 1)))
        L += 1
    x = x.astype(jnp.float32)
    y_l = (x[:, :, 0::2] + x[:, :, 1::2]) * 0.5
    y_h = y_l                                  # height-1 Haar, mode='zero': LH band == LL
    cat = jnp.concatenate([y_l, y_h], axis=1)  # (B, 2C, Lh)
    y = jnp.einsum("oi,bil->bol", w.astype(jnp.float32), cat) + bias[None, :, None]
    y = (y - running_mean[None, :, None]) / jnp.sqrt(running_var[None, :, None] + BN_EPS)
    y = y * gamma[None, :, None] + beta[None, :, None]
    return jnp.maximum(y, 0.0)


if __name__ == "__main__":
    def make_params(key, cin, cout, identity_bn=False):
        ks = jax.random.split(key, 6)
        w = 0.1 * jax.random.normal(ks[0], (cout, 2 * cin), jnp.float32)
        b = 0.1 * jax.random.normal(ks[1], (cout,), jnp.float32)
        if identity_bn:
            gamma = jnp.ones((cout,), jnp.float32)
            beta = jnp.zeros((cout,), jnp.float32)
            mean = jnp.zeros((cout,), jnp.float32)
            var = jnp.ones((cout,), jnp.float32)
        else:
            gamma = 1.0 + 0.1 * jax.random.normal(ks[2], (cout,), jnp.float32)
            beta = 0.1 * jax.random.normal(ks[3], (cout,), jnp.float32)
            mean = 0.1 * jax.random.normal(ks[4], (cout,), jnp.float32)
            var = 0.5 + jax.random.uniform(ks[5], (cout,), jnp.float32)
        return w, b, gamma, beta, mean, var

    def check(name, x, params, rtol, atol):
        out = jax.block_until_ready(wavelet_pool_1d(x, *params))
        ref = reference_forward(x, *params)
        assert out.shape == ref.shape, (name, out.shape, ref.shape)
        np.testing.assert_allclose(np.asarray(out, dtype=np.float32),
                                   np.asarray(ref, dtype=np.float32),
                                   rtol=rtol, atol=atol, err_msg=name)

    k0, k1, k2, k3, k4 = jax.random.split(jax.random.PRNGKey(0), 5)

    # 1) module defaults (out_ch == in_ch), identity BN, tiny shape
    x1 = jax.random.normal(k0, (2, 4, 16), jnp.float32)
    check("small", x1, make_params(k1, 4, 4, identity_bn=True), 2e-5, 2e-5)

    # 2) odd length, multiple L tiles packed per grid step (kl=2), out_ch > in_ch, real BN
    x2 = jax.random.normal(k1, (2, 8, 1999), jnp.float32)
    check("multi_tile", x2, make_params(k2, 8, 16), 1e-4, 1e-4)

    # 3) batch blocking with batch padding (B=10 -> bb=8) and mix-first order (out_ch < C)
    x3 = jax.random.normal(k2, (10, 64, 701), jnp.float32)
    check("batch_block_mix_first", x3, make_params(k3, 64, 16), 1e-4, 1e-4)

    # 4) bf16 input path: bf16 x and bf16 S feed the MXU directly (no f32 upcast)
    x4 = jax.random.normal(k3, (2, 16, 512), jnp.float32).astype(jnp.bfloat16)
    check("bf16", x4, make_params(k4, 16, 16), 2e-2, 2e-2)

    print("KERNEL_OK")
</pallas_src>

<mosaic_0001>
module attributes {stable_mosaic.version = 11 : i64} {
  func.func @_wavelet_pool_kernel(%arg0: i32, %arg1: i32, %arg2: memref<8x16xf32, #tpu.memory_space<vmem>>, %arg3: memref<16x8xf32, #tpu.memory_space<vmem>>, %arg4: memref<4x4xf32, #tpu.memory_space<vmem>>, %arg5: memref<8x1xf32, #tpu.memory_space<vmem>>, %arg6: memref<8x8xf32, #tpu.memory_space<vmem>>, %arg7: memref<8x8xf32, #tpu.memory_space<vmem>>) attributes {dimension_semantics = [#tpu.dimension_semantics<parallel>, #tpu.dimension_semantics<parallel>], iteration_bounds = array<i64: 1, 1>, scalar_prefetch = 0 : i64, scratch_operands = 1 : i64, tpu.core_type = #tpu.core_type<tc>, window_params = [{transform_indices = @transform_0, window_bounds = array<i64: 8, 16>}, {pipeline_mode = #tpu.pipeline_mode<synchronous>, transform_indices = @transform_1, window_bounds = array<i64: 16, 8>}, {pipeline_mode = #tpu.pipeline_mode<synchronous>, transform_indices = @transform_2, window_bounds = array<i64: 4, 4>}, {pipeline_mode = #tpu.pipeline_mode<synchronous>, transform_indices = @transform_3, window_bounds = array<i64: 8, 1>}, {transform_indices = @transform_4, window_bounds = array<i64: 8, 8>}]} {
    %c0 = arith.constant 0 : index
    %c0_0 = arith.constant 0 : index
    %0 = vector.load %arg3[%c0, %c0_0] : memref<16x8xf32, #tpu.memory_space<vmem>>, vector<16x8xf32>
    %c0_1 = arith.constant 0 : index
    %c0_2 = arith.constant 0 : index
    %1 = vector.load %arg4[%c0_1, %c0_2] : memref<4x4xf32, #tpu.memory_space<vmem>>, vector<4x4xf32>
    %c0_3 = arith.constant 0 : index
    %c0_4 = arith.constant 0 : index
    %2 = vector.load %arg5[%c0_3, %c0_4] : memref<8x1xf32, #tpu.memory_space<vmem>>, vector<4x1xf32>
    %c0_5 = arith.constant 0 : index
    %c0_6 = arith.constant 0 : index
    %3 = vector.load %arg2[%c0_5, %c0_6] : memref<8x16xf32, #tpu.memory_space<vmem>>, vector<8x16xf32>
    %cst = arith.constant dense<0.000000e+00> : vector<8x8xf32>
    %4 = tpu.matmul %3, %0, %cst {dimension_numbers = #tpu.dot_dimension_numbers<[1], [0], [0], [1], [0, 0, 1, 1], [], []>} : vector<8x16xf32>, vector<16x8xf32>, vector<8x8xf32> -> vector<8x8xf32>
    %c0_7 = arith.constant 0 : index
    %c0_8 = arith.constant 0 : index
    %5 = vector.load %arg7[%c0_7, %c0_8] : memref<8x8xf32, #tpu.memory_space<vmem>>, vector<8x8xf32>
    tpu.vector_store %arg7[%c0_7, %c0_8], %4 {strides = array<i32>} : memref<8x8xf32, #tpu.memory_space<vmem>>, vector<8x8xf32>,
    %c0_9 = arith.constant 0 : index
    %c0_10 = arith.constant 0 : index
    %6 = vector.load %arg7[%c0_9, %c0_10] : memref<8x8xf32, #tpu.memory_space<vmem>>, vector<4x8xf32>
    %cst_11 = arith.constant dense<0.000000e+00> : vector<4x8xf32>
    %7 = tpu.matmul %1, %6, %cst_11 {dimension_numbers = #tpu.dot_dimension_numbers<[1], [0], [0], [1], [0, 0, 1, 1], [], []>} : vector<4x4xf32>, vector<4x8xf32>, vector<4x8xf32> -> vector<4x8xf32>
    %8 = vector.broadcast %2 : vector<4x1xf32> to vector<4x8xf32>
    %9 = arith.addf %7, %8 : vector<4x8xf32>
    %cst_12 = arith.constant 0.000000e+00 : f32
    %10 = vector.broadcast %cst_12 : f32 to vector<4x8xf32>
    %11 = arith.maximumf %9, %10 : vector<4x8xf32>
    %c0_13 = arith.constant 0 : index
    %c0_14 = arith.constant 0 : index
    %12 = vector.load %arg6[%c0_13, %c0_14] : memref<8x8xf32, #tpu.memory_space<vmem>>, vector<4x8xf32>
    tpu.vector_store %arg6[%c0_13, %c0_14], %11 {strides = array<i32>} : memref<8x8xf32, #tpu.memory_space<vmem>>, vector<4x8xf32>,
    %c4 = arith.constant 4 : index
    %c0_15 = arith.constant 0 : index
    %13 = vector.load %arg7[%c4, %c0_15] : memref<8x8xf32, #tpu.memory_space<vmem>>, vector<4x8xf32>
    %cst_16 = arith.constant dense<0.000000e+00> : vector<4x8xf32>
    %14 = tpu.matmul %1, %13, %cst_16 {dimension_numbers = #tpu.dot_dimension_numbers<[1], [0], [0], [1], [0, 0, 1, 1], [], []>} : vector<4x4xf32>, vector<4x8xf32>, vector<4x8xf32> -> vector<4x8xf32>
    %15 = vector.broadcast %2 : vector<4x1xf32> to vector<4x8xf32>
    %16 = arith.addf %14, %15 : vector<4x8xf32>
    %cst_17 = arith.constant 0.000000e+00 : f32
    %17 = vector.broadcast %cst_17 : f32 to vector<4x8xf32>
    %18 = arith.maximumf %16, %17 : vector<4x8xf32>
    %c4_18 = arith.constant 4 : index
    %c0_19 = arith.constant 0 : index
    %19 = vector.load %arg6[%c4_18, %c0_19] : memref<8x8xf32, #tpu.memory_space<vmem>>, vector<4x8xf32>
    tpu.vector_store %arg6[%c4_18, %c0_19], %18 {strides = array<i32>} : memref<8x8xf32, #tpu.memory_space<vmem>>, vector<4x8xf32>,
    return
  }
  func.func @transform_0(%arg0: i32, %arg1: i32) -> (i32, i32) {
    %c0_i32 = arith.constant 0 : i32
    return %arg0, %arg1 : i32, i32
  }
  func.func @transform_1(%arg0: i32, %arg1: i32) -> (i32, i32) {
    %c0_i32 = arith.constant 0 : i32
    %c0_i32_0 = arith.constant 0 : i32
    %c0_i32_1 = arith.constant 0 : i32
    return %c0_i32, %c0_i32_0 : i32, i32
  }
  func.func @transform_2(%arg0: i32, %arg1: i32) -> (i32, i32) {
    %c0_i32 = arith.constant 0 : i32
    %c0_i32_0 = arith.constant 0 : i32
    %c0_i32_1 = arith.constant 0 : i32
    return %c0_i32, %c0_i32_0 : i32, i32
  }
  func.func @transform_3(%arg0: i32, %arg1: i32) -> (i32, i32) {
    %c0_i32 = arith.constant 0 : i32
    %c0_i32_0 = arith.constant 0 : i32
    %c0_i32_1 = arith.constant 0 : i32
    return %c0_i32, %c0_i32_0 : i32, i32
  }
  func.func @transform_4(%arg0: i32, %arg1: i32) -> (i32, i32) {
    %c0_i32 = arith.constant 0 : i32
    return %arg0, %arg1 : i32, i32
  }
}

</mosaic_0001>

<bundles_post_ra>
// kernel: tpu_custom_call.1
= control target key start
LH: loop header
LB: loop body
LE: loop exit
PB: predicated region body
PF: predicated region fallthrough
CT: control target
= control target key end

     0   :  { %v338_v2 = vmov 0.0|0.0   ;;  %vm339_vm0 = vmmov 0   ;;  %v340_v4 = vmov 0.0   ;;  %s398_s0 = inlined_call_operand.vmem [shape: f32[8,16], index: 0, kind: input, shape index: {}]   ;;  %s399_s1 = inlined_call_operand.vmem [shape: f32[16,8], index: 1, kind: input, shape index: {}]   ;;  %s400_s2 = inlined_call_operand.vmem [shape: f32[4,4], index: 2, kind: input, shape index: {}]   ;;  %s401_s3 = inlined_call_operand.vmem [shape: f32[8,1], index: 3, kind: input, shape index: {}]   ;;  %s402_s4 = inlined_call_operand.hbm [shape: f32[8,8], index: 4, kind: output, shape index: {}]  }
   0x1   :  { %v18_v0 = vld [vmem:[%s399_s1] sm:$0xff]  ;;  %v19_v1 = vld [vmem:[%s399_s1 + $0x8] sm:$0xff]  ;;  %305 = vmatprep.subr.bf16.mxu0 %v338_v2  ;;  %292 = vmatprep.mubr.msk.f32.mxu0 %vm339_vm0, %v340_v4 }
   0x2   :  { %v306_v3 = vpack.c.bf16 %v19_v1, %v18_v0 }
   0x3   :  { %9 = vsyncpa [#allocation4], 0  ;;  %295 = vmatprep.subr.mxu1 %v340_v4  ;;  %297 = vmatprep.mubr.msk.f32.mxu1 %vm339_vm0, %v340_v4  ;;  %v22_v5 = vld [vmem:[%s398_s0] sm:$0xff]  ;;  %vm23_vm1 = vcmask 130048   ;;  %v341_v7 = vmov 0   ;;  %vm97_vm2 = vcmask 64512  }
   0x4   :  { %307 = vmatpush3.bf16.msra.mxu0 %v306_v3  ;;  %v21_v6 = vld [vmem:[%s401_s3] sm:$0xf]  ;;  %313 = vset.pattern.permute.xlu0 %v341_v7  ;;  %vm109_vm3 = vcmask 1043456   ;;  %vm105_vm4 = vcmask 31744   ;;  %vm184_vm5 = vcmask 60416   ;;  %s342_s0 = smov [#allocation3]  }
   0x5   :  { %102 = vperm.xlu0 %313, %v21_v6   ;;  %v20_v10 = vld [vmem:[%s400_s2] sm:$0xf]  ;;  %s268_s3 = sshll.u32 %s342_s0, 4  ;;  %s269_s3 = int_to_ptr.vmem [resolvable:$true] %s268_s3 }
   0x6   :  { %s314_s2 = scalar_lea.vmem %s269_s3, 128  ;;  %p319_p1 = scmp.lt.s32.totalorder %s269_s3, %s269_s3 }
   0x7   :  { %293 = vmatmul.mubr.msk.f32.vlgmr.msra.gmra.mrb[0].mxu0 %vm23_vm1, %v22_v5  ;;  %p315_p0 = scmp.ne.s32.totalorder %s269_s3, %s314_s2  ;;  %p320_p2 = scmp.lt.s32.totalorder %s314_s2, %s314_s2 }
   0x9   :  { %p321_p3 = por %p320_p2, %p319_p1 }
   0xb   :  { %p322_p4 = pnand %p321_p3, %p315_p0 }
  0x84   :  { %v103_v13 = vpop.permute.xlu0 %102 }
  0xda   :  { %v93_v8 = vpop.f32.mrb[0].mxu0 }
  0xdb   :  { %98 = vst.msk [vmem:[#allocation2] sm:$0xff] %vm97_vm2, %v93_v8  ;;  %v294_v9 = vpop.f32.mrb[1].mxu0 }
  0xe2   :  { %v99_v11 = vld [vmem:[#allocation2] sm:$0xf]  ;;  %v186_v12 = vld [vmem:[#allocation2 + $0x4] sm:$0xf] }
  0xe3   :  { %296 = vmatpush3.msk.msra.mxu1 %vm109_vm3, %v99_v11 }
  0xe4   :  { %298 = vmatmul.mubr.msk.f32.vlgmr.msra.gmra.mrb[0].mxu1 %vm105_vm4, %v20_v10  ;;  %300 = vmatprep.subr.mxu1 %v340_v4 }
  0xe5   :  { %301 = vmatpush3.msk.msra.mxu1 %vm109_vm3, %v186_v12  ;;  %302 = vmatprep.mubr.msk.f32.mxu1 %vm339_vm0, %v340_v4 }
  0xe8   :  { %303 = vmatmul.mubr.msk.f32.vlgmr.msra.gmra.mrb[2].mxu1 %vm105_vm4, %v20_v10 }
 0x1b7   :  { %v179_v14 = vpop.f32.mrb[0].mxu1 }
 0x1b8   :  { %v180_v15 = vadd.f32 %v179_v14, %v103_v13  ;;  %v299_v16 = vpop.f32.mrb[1].mxu1 }
 0x1ba   :  { %v183_v17 = vmax.f32 %v180_v15, 0.0 }
 0x1bb   :  { %v256_v18 = vpop.f32.mrb[2].mxu1 }
 0x1bc   :  { %185 = vst.msk [vmem:[#allocation3] sm:$0xf] %vm184_vm5, %v183_v17  ;;  %v257_v19 = vadd.f32 %v256_v18, %v103_v13  ;;  %v304_v20 = vpop.f32.mrb[3].mxu1 }
 0x1be   :  { %v260_v21 = vmax.f32 %v257_v19, 0.0 }
 0x1c0   :  { %261 = vst.msk [vmem:[#allocation3 + $0x4] sm:$0xf] %vm184_vm5, %v260_v21 }
 0x1c1   :  { %325 = shalt.err (!%p322_p4)
}
 0x1c2   :  { %s326_s26 = scalar_lea.hbm %s402_s4, 128 }
 0x1c3   :  { %p327_p5 = scmp.ne.s32.totalorder %s402_s4, %s326_s26  ;;  %p330_p6 = scmp.lt.u32.totalorder %s326_s26, %s402_s4 }
 0x1c5   :  { %p332_p7 = pnand %p330_p6, %p327_p5 }
 0x1c7   :  { %335 = shalt.err (!%p332_p7)
}
 0x1c8   :  { %271 = dma.vmem_to_hbm [thread:$0]  %s269_s3, 128, %s402_s4, [#allocation4]  }
 0x1c9   :  { %336 = dma.done.wait [#allocation4], 128  }
 0x1ca   :  { %337 = vsyncadd [#allocation4], 4294967168 }
 0x1cb   :  { %275 = vsyncpa [#allocation4], 1 }

</bundles_post_ra>
